<compile_context>
chip_gen: v5e
topology: v5e:2x2
jax: 0.10.0
libtpu: 0.0.40
codegen_flags: <defaults>
</compile_context>

<pallas_src>
import functools

import jax
import jax.numpy as jnp
from jax.experimental import pallas as pl
from jax.experimental.pallas import tpu as pltpu

LN_EPS = 1e-5   # PyTorch nn.LayerNorm default
LANE = 128      # TPU lane width


def _cdiv(a, b):
    return -(-a // b)


def _round_up(x, m):
    return ((x + m - 1) // m) * m


def _resmlp_kernel(n_layers, hidden_dim, input_dim,
                   x_ref, w_ref, b_ref, ln_ref, o_ref):
    """Fused ResMLP forward on one (TM, input_dim) batch tile.

    x_ref : (TM, input_dim)         unpadded input tile
    w_ref : (n_layers+1, P, P)      pre-transposed, zero-padded Linear weights
    b_ref : (n_layers+1, 1, P)      Linear biases (zero-padded)
    ln_ref: (n_layers, 2, 1, P)     [l, 0]=gamma, [l, 1]=beta (zero-padded)
    o_ref : (TM, input_dim)
    """
    x = x_ref[...].astype(jnp.float32)                      # (TM, input_dim)
    inv_h = jnp.float32(1.0 / hidden_dim)

    # First Linear: (TM, input_dim) @ (input_dim, P).  Padded hidden lanes of h
    # are exactly zero (zero weight columns + zero bias).
    h = jnp.dot(x.astype(w_ref.dtype), w_ref[0, :input_dim, :],
                preferred_element_type=jnp.float32) + b_ref[0]

    for l in range(n_layers):
        if l > 0:
            # Hidden Linear on full 128-lane tiles (zero-padded rows/cols).
            h = jnp.dot(h.astype(w_ref.dtype), w_ref[l],
                        preferred_element_type=jnp.float32) + b_ref[l]
        # LayerNorm over the true hidden_dim (PyTorch biased variance).
        # Padded lanes of h are exactly zero, so unmasked sums are correct;
        # single-pass variance avoids a separate centering pass.
        mu = jnp.sum(h, axis=-1, keepdims=True) * inv_h
        var = jnp.sum(h * h, axis=-1, keepdims=True) * inv_h - mu * mu
        h = (h - mu) * jax.lax.rsqrt(var + LN_EPS)
        # gamma=beta=0 on padded lanes -> padded lanes return to exactly zero.
        h = h * ln_ref[l, 0] + ln_ref[l, 1]
        h = jnp.maximum(h, 0.0)                              # ReLU

    # Final Linear back to input_dim; only the true columns are nonzero.
    y = jnp.dot(h.astype(w_ref.dtype), w_ref[n_layers],
                preferred_element_type=jnp.float32)
    y = y[:, :input_dim] + b_ref[n_layers, :, :input_dim]

    # Residual connection; store only the true input_dim columns.
    o_ref[...] = (x + y).astype(o_ref.dtype)


def init_resmlp_params(key, input_dim, hidden_dim, n_layers, dtype=jnp.float32):
    """Deterministic synthetic params, PyTorch-Linear-like uniform init.

    Returns a list of n_layers tuples (W (in,hid), b (hid,), gamma, beta)
    followed by one tuple (W_out (hid,in), b_out (in,)).  Weights are stored
    pre-transposed: kernel computes h @ W + b (== PyTorch x @ W.T + b).
    """
    params = []
    fan_ins = [input_dim] + [hidden_dim] * (n_layers - 1)
    for fan_in in fan_ins:
        key, kw, kb = jax.random.split(key, 3)
        bound = 1.0 / float(fan_in) ** 0.5
        w = jax.random.uniform(kw, (fan_in, hidden_dim), dtype, -bound, bound)
        b = jax.random.uniform(kb, (hidden_dim,), dtype, -bound, bound)
        g = jnp.ones((hidden_dim,), dtype)
        beta = jnp.zeros((hidden_dim,), dtype)
        params.append((w, b, g, beta))
    key, kw, kb = jax.random.split(key, 3)
    bound = 1.0 / float(hidden_dim) ** 0.5
    w_out = jax.random.uniform(kw, (hidden_dim, input_dim), dtype, -bound, bound)
    b_out = jax.random.uniform(kb, (input_dim,), dtype, -bound, bound)
    params.append((w_out, b_out))
    return params


def pack_params(params, input_dim, hidden_dim, n_layers, param_dtype=jnp.float32):
    """Zero-pad all feature dims to the 128-lane width and pack into 3 arrays.

    param_dtype=jnp.bfloat16 is recommended on v6e/v7x (native MXU rate, half
    the resident VMEM), at the cost of looser numerics vs. the f32 reference.
    """
    P = max(_round_up(input_dim, LANE), _round_up(hidden_dim, LANE))
    w_stack = jnp.zeros((n_layers + 1, P, P), param_dtype)
    b_stack = jnp.zeros((n_layers + 1, 1, P), jnp.float32)
    ln_stack = jnp.zeros((n_layers, 2, 1, P), jnp.float32)
    for l in range(n_layers):
        w, b, g, beta = params[l]
        fi, fo = w.shape
        w_stack = w_stack.at[l, :fi, :fo].set(w.astype(param_dtype))
        b_stack = b_stack.at[l, 0, :fo].set(b.astype(jnp.float32))
        ln_stack = ln_stack.at[l, 0, 0, :fo].set(g.astype(jnp.float32))
        ln_stack = ln_stack.at[l, 1, 0, :fo].set(beta.astype(jnp.float32))
    w_out, b_out = params[n_layers]
    fi, fo = w_out.shape
    w_stack = w_stack.at[n_layers, :fi, :fo].set(w_out.astype(param_dtype))
    b_stack = b_stack.at[n_layers, 0, :fo].set(b_out.astype(jnp.float32))
    return w_stack, b_stack, ln_stack


def _choose_tm(batch, *, tm_target=1024, min_steps=2):
    """Pick a batch tile: large enough to amortize per-step overhead (~0.35us),
    small enough that the grid has >= min_steps steps (v7x megacore) and the
    batch is never rounded up to a full multiple of a huge tile."""
    rows = _round_up(batch, 8)
    if rows <= 8 * min_steps:          # tiny batch: one step is best
        return rows
    n_steps = max(min_steps, _cdiv(rows, tm_target))
    return _round_up(_cdiv(rows, n_steps), 8)


def resmlp_forward(x, w_stack, b_stack, ln_stack, n_layers, hidden_dim, *,
                   tm_target=1024):
    """Run the fused ResMLP Pallas kernel.  x: (batch, input_dim) f32."""
    batch, input_dim = x.shape

    tm = _choose_tm(batch, tm_target=tm_target)
    grid = _cdiv(_round_up(batch, 8), tm)
    batch_p = grid * tm

    # Pad only batch rows (zeros); no lane padding of the streamed arrays.
    if batch_p != batch:
        x_p = jnp.zeros((batch_p, input_dim), x.dtype).at[:batch].set(x)
    else:
        x_p = x

    kernel = functools.partial(_resmlp_kernel, n_layers, hidden_dim, input_dim)

    def _param_spec(a, single_buffer):
        nd = a.ndim
        idx = lambda i, _nd=nd: (0,) * _nd
        if single_buffer:
            # Constant index map -> one resident buffer is enough.
            return pl.BlockSpec(a.shape, idx, pipeline_mode=pl.Buffered(1))
        return pl.BlockSpec(a.shape, idx)

    def _call(single_buffer):
        return pl.pallas_call(
            kernel,
            out_shape=jax.ShapeDtypeStruct((batch_p, input_dim), x.dtype),
            grid=(grid,),
            in_specs=[
                pl.BlockSpec((tm, input_dim), lambda i: (i, 0)),  # x streams
                _param_spec(w_stack, single_buffer),              # params resident
                _param_spec(b_stack, single_buffer),
                _param_spec(ln_stack, single_buffer),
            ],
            out_specs=pl.BlockSpec((tm, input_dim), lambda i: (i, 0)),
            compiler_params=pltpu.CompilerParams(
                dimension_semantics=("parallel",),   # shard batch tiles on v7x
                vmem_limit_bytes=32 << 20,
            ),
        )(x_p, w_stack, b_stack, ln_stack)

    try:
        out_p = _call(True)
    except Exception:
        # pl.Buffered(1) not supported on this jax version -> default buffering.
        out_p = _call(False)

    return out_p[:batch] if batch_p != batch else out_p


def resmlp_reference(x, params, n_layers):
    """Pure-JAX reference (matches the PyTorch module)."""
    h = x
    for l in range(n_layers):
        w, b, g, beta = params[l]
        h = h @ w + b
        mu = jnp.mean(h, axis=-1, keepdims=True)
        var = jnp.mean((h - mu) ** 2, axis=-1, keepdims=True)
        h = (h - mu) / jnp.sqrt(var + LN_EPS)
        h = h * g + beta
        h = jnp.maximum(h, 0.0)
    w_out, b_out = params[n_layers]
    return x + h @ w_out + b_out


if __name__ == "__main__":
    input_dim = 32
    hidden_dim = 64
    n_layers = 3

    key = jax.random.PRNGKey(0)
    key, k_p = jax.random.split(key)
    params = init_resmlp_params(k_p, input_dim, hidden_dim, n_layers)
    w_stack, b_stack, ln_stack = pack_params(params, input_dim, hidden_dim, n_layers)

    # Small batch (single grid step) and a larger batch that exercises the
    # multi-step batch grid (>= 2 steps for the v7x megacore path).
    for batch in (8, 384):
        key, k_x = jax.random.split(key)
        x = jax.random.normal(k_x, (batch, input_dim), jnp.float32)

        out = resmlp_forward(x, w_stack, b_stack, ln_stack, n_layers, hidden_dim)
        out = jax.block_until_ready(out)

        ref = resmlp_reference(x, params, n_layers)
        assert out.shape == (batch, input_dim)
        assert jnp.allclose(out, ref, atol=1e-4, rtol=1e-4), f"mismatch at batch={batch}"

    print("KERNEL_OK")
</pallas_src>

<mosaic_0001>
module attributes {stable_mosaic.version = 11 : i64} {
  func.func @_resmlp_kernel(%arg0: i32, %arg1: memref<8x32xf32, #tpu.memory_space<vmem>>, %arg2: memref<4x128x128xf32, #tpu.memory_space<vmem>>, %arg3: memref<4x1x128xf32, #tpu.memory_space<vmem>>, %arg4: memref<3x2x1x128xf32, #tpu.memory_space<vmem>>, %arg5: memref<8x32xf32, #tpu.memory_space<vmem>>) attributes {dimension_semantics = [#tpu.dimension_semantics<parallel>], iteration_bounds = array<i64: 1>, scalar_prefetch = 0 : i64, scratch_operands = 0 : i64, tpu.core_type = #tpu.core_type<tc>, window_params = [{transform_indices = @transform_0, window_bounds = array<i64: 8, 32>}, {pipeline_mode = #tpu.pipeline_mode<synchronous>, transform_indices = @transform_1, window_bounds = array<i64: 4, 128, 128>}, {pipeline_mode = #tpu.pipeline_mode<synchronous>, transform_indices = @transform_2, window_bounds = array<i64: 4, 1, 128>}, {pipeline_mode = #tpu.pipeline_mode<synchronous>, transform_indices = @transform_3, window_bounds = array<i64: 3, 2, 1, 128>}, {transform_indices = @transform_4, window_bounds = array<i64: 8, 32>}]} {
    %c0 = arith.constant 0 : index
    %c0_0 = arith.constant 0 : index
    %0 = vector.load %arg1[%c0, %c0_0] : memref<8x32xf32, #tpu.memory_space<vmem>>, vector<8x32xf32>
    %c0_1 = arith.constant 0 : index
    %c0_2 = arith.constant 0 : index
    %c0_3 = arith.constant 0 : index
    %1 = vector.load %arg2[%c0_1, %c0_2, %c0_3] : memref<4x128x128xf32, #tpu.memory_space<vmem>>, vector<1x32x128xf32>
    %2 = vector.shape_cast %1 : vector<1x32x128xf32> to vector<32x128xf32>
    %cst = arith.constant dense<0.000000e+00> : vector<8x128xf32>
    %3 = tpu.matmul %0, %2, %cst {dimension_numbers = #tpu.dot_dimension_numbers<[1], [0], [0], [1], [0, 0, 1, 1], [], []>} : vector<8x32xf32>, vector<32x128xf32>, vector<8x128xf32> -> vector<8x128xf32>
    %c0_4 = arith.constant 0 : index
    %c0_5 = arith.constant 0 : index
    %c0_6 = arith.constant 0 : index
    %4 = vector.load %arg3[%c0_4, %c0_5, %c0_6] : memref<4x1x128xf32, #tpu.memory_space<vmem>>, vector<1x1x128xf32>
    %5 = vector.shape_cast %4 : vector<1x1x128xf32> to vector<1x128xf32>
    %6 = vector.broadcast %5 : vector<1x128xf32> to vector<8x128xf32>
    %7 = arith.addf %3, %6 : vector<8x128xf32>
    %cst_7 = arith.constant dense<0.000000e+00> : vector<8xf32>
    %8 = vector.multi_reduction <add>, %7, %cst_7 [1] : vector<8x128xf32> to vector<8xf32>
    %9 = vector.shape_cast %8 : vector<8xf32> to vector<8x1xf32>
    %cst_8 = arith.constant 1.562500e-02 : f32
    %10 = vector.broadcast %cst_8 : f32 to vector<8x1xf32>
    %11 = arith.mulf %9, %10 : vector<8x1xf32>
    %12 = arith.mulf %7, %7 : vector<8x128xf32>
    %cst_9 = arith.constant dense<0.000000e+00> : vector<8xf32>
    %13 = vector.multi_reduction <add>, %12, %cst_9 [1] : vector<8x128xf32> to vector<8xf32>
    %14 = vector.shape_cast %13 : vector<8xf32> to vector<8x1xf32>
    %cst_10 = arith.constant 1.562500e-02 : f32
    %15 = vector.broadcast %cst_10 : f32 to vector<8x1xf32>
    %16 = arith.mulf %14, %15 : vector<8x1xf32>
    %17 = arith.mulf %11, %11 : vector<8x1xf32>
    %18 = arith.subf %16, %17 : vector<8x1xf32>
    %19 = vector.broadcast %11 : vector<8x1xf32> to vector<8x128xf32>
    %20 = arith.subf %7, %19 : vector<8x128xf32>
    %cst_11 = arith.constant 9.99999974E-6 : f32
    %21 = vector.broadcast %cst_11 : f32 to vector<8x1xf32>
    %22 = arith.addf %18, %21 : vector<8x1xf32>
    %23 = math.rsqrt %22 : vector<8x1xf32>
    %24 = vector.broadcast %23 : vector<8x1xf32> to vector<8x128xf32>
    %25 = arith.mulf %20, %24 : vector<8x128xf32>
    %c0_12 = arith.constant 0 : index
    %c0_13 = arith.constant 0 : index
    %c0_14 = arith.constant 0 : index
    %c0_15 = arith.constant 0 : index
    %26 = vector.load %arg4[%c0_12, %c0_13, %c0_14, %c0_15] : memref<3x2x1x128xf32, #tpu.memory_space<vmem>>, vector<1x1x1x128xf32>
    %27 = vector.shape_cast %26 : vector<1x1x1x128xf32> to vector<1x128xf32>
    %28 = vector.broadcast %27 : vector<1x128xf32> to vector<8x128xf32>
    %29 = arith.mulf %25, %28 : vector<8x128xf32>
    %c0_16 = arith.constant 0 : index
    %c1 = arith.constant 1 : index
    %c0_17 = arith.constant 0 : index
    %c0_18 = arith.constant 0 : index
    %30 = vector.load %arg4[%c0_16, %c1, %c0_17, %c0_18] : memref<3x2x1x128xf32, #tpu.memory_space<vmem>>, vector<1x1x1x128xf32>
    %31 = vector.shape_cast %30 : vector<1x1x1x128xf32> to vector<1x128xf32>
    %32 = vector.broadcast %31 : vector<1x128xf32> to vector<8x128xf32>
    %33 = arith.addf %29, %32 : vector<8x128xf32>
    %cst_19 = arith.constant 0.000000e+00 : f32
    %34 = vector.broadcast %cst_19 : f32 to vector<8x128xf32>
    %35 = arith.maximumf %33, %34 : vector<8x128xf32>
    %c1_20 = arith.constant 1 : index
    %c0_21 = arith.constant 0 : index
    %c0_22 = arith.constant 0 : index
    %36 = vector.load %arg2[%c1_20, %c0_21, %c0_22] : memref<4x128x128xf32, #tpu.memory_space<vmem>>, vector<1x128x128xf32>
    %37 = vector.shape_cast %36 : vector<1x128x128xf32> to vector<128x128xf32>
    %cst_23 = arith.constant dense<0.000000e+00> : vector<8x128xf32>
    %38 = tpu.matmul %35, %37, %cst_23 {dimension_numbers = #tpu.dot_dimension_numbers<[1], [0], [0], [1], [0, 0, 1, 1], [], []>} : vector<8x128xf32>, vector<128x128xf32>, vector<8x128xf32> -> vector<8x128xf32>
    %c1_24 = arith.constant 1 : index
    %c0_25 = arith.constant 0 : index
    %c0_26 = arith.constant 0 : index
    %39 = vector.load %arg3[%c1_24, %c0_25, %c0_26] : memref<4x1x128xf32, #tpu.memory_space<vmem>>, vector<1x1x128xf32>
    %40 = vector.shape_cast %39 : vector<1x1x128xf32> to vector<1x128xf32>
    %41 = vector.broadcast %40 : vector<1x128xf32> to vector<8x128xf32>
    %42 = arith.addf %38, %41 : vector<8x128xf32>
    %cst_27 = arith.constant dense<0.000000e+00> : vector<8xf32>
    %43 = vector.multi_reduction <add>, %42, %cst_27 [1] : vector<8x128xf32> to vector<8xf32>
    %44 = vector.shape_cast %43 : vector<8xf32> to vector<8x1xf32>
    %cst_28 = arith.constant 1.562500e-02 : f32
    %45 = vector.broadcast %cst_28 : f32 to vector<8x1xf32>
    %46 = arith.mulf %44, %45 : vector<8x1xf32>
    %47 = arith.mulf %42, %42 : vector<8x128xf32>
    %cst_29 = arith.constant dense<0.000000e+00> : vector<8xf32>
    %48 = vector.multi_reduction <add>, %47, %cst_29 [1] : vector<8x128xf32> to vector<8xf32>
    %49 = vector.shape_cast %48 : vector<8xf32> to vector<8x1xf32>
    %cst_30 = arith.constant 1.562500e-02 : f32
    %50 = vector.broadcast %cst_30 : f32 to vector<8x1xf32>
    %51 = arith.mulf %49, %50 : vector<8x1xf32>
    %52 = arith.mulf %46, %46 : vector<8x1xf32>
    %53 = arith.subf %51, %52 : vector<8x1xf32>
    %54 = vector.broadcast %46 : vector<8x1xf32> to vector<8x128xf32>
    %55 = arith.subf %42, %54 : vector<8x128xf32>
    %cst_31 = arith.constant 9.99999974E-6 : f32
    %56 = vector.broadcast %cst_31 : f32 to vector<8x1xf32>
    %57 = arith.addf %53, %56 : vector<8x1xf32>
    %58 = math.rsqrt %57 : vector<8x1xf32>
    %59 = vector.broadcast %58 : vector<8x1xf32> to vector<8x128xf32>
    %60 = arith.mulf %55, %59 : vector<8x128xf32>
    %c1_32 = arith.constant 1 : index
    %c0_33 = arith.constant 0 : index
    %c0_34 = arith.constant 0 : index
    %c0_35 = arith.constant 0 : index
    %61 = vector.load %arg4[%c1_32, %c0_33, %c0_34, %c0_35] : memref<3x2x1x128xf32, #tpu.memory_space<vmem>>, vector<1x1x1x128xf32>
    %62 = vector.shape_cast %61 : vector<1x1x1x128xf32> to vector<1x128xf32>
    %63 = vector.broadcast %62 : vector<1x128xf32> to vector<8x128xf32>
    %64 = arith.mulf %60, %63 : vector<8x128xf32>
    %c1_36 = arith.constant 1 : index
    %c1_37 = arith.constant 1 : index
    %c0_38 = arith.constant 0 : index
    %c0_39 = arith.constant 0 : index
    %65 = vector.load %arg4[%c1_36, %c1_37, %c0_38, %c0_39] : memref<3x2x1x128xf32, #tpu.memory_space<vmem>>, vector<1x1x1x128xf32>
    %66 = vector.shape_cast %65 : vector<1x1x1x128xf32> to vector<1x128xf32>
    %67 = vector.broadcast %66 : vector<1x128xf32> to vector<8x128xf32>
    %68 = arith.addf %64, %67 : vector<8x128xf32>
    %cst_40 = arith.constant 0.000000e+00 : f32
    %69 = vector.broadcast %cst_40 : f32 to vector<8x128xf32>
    %70 = arith.maximumf %68, %69 : vector<8x128xf32>
    %c2 = arith.constant 2 : index
    %c0_41 = arith.constant 0 : index
    %c0_42 = arith.constant 0 : index
    %71 = vector.load %arg2[%c2, %c0_41, %c0_42] : memref<4x128x128xf32, #tpu.memory_space<vmem>>, vector<1x128x128xf32>
    %72 = vector.shape_cast %71 : vector<1x128x128xf32> to vector<128x128xf32>
    %cst_43 = arith.constant dense<0.000000e+00> : vector<8x128xf32>
    %73 = tpu.matmul %70, %72, %cst_43 {dimension_numbers = #tpu.dot_dimension_numbers<[1], [0], [0], [1], [0, 0, 1, 1], [], []>} : vector<8x128xf32>, vector<128x128xf32>, vector<8x128xf32> -> vector<8x128xf32>
    %c2_44 = arith.constant 2 : index
    %c0_45 = arith.constant 0 : index
    %c0_46 = arith.constant 0 : index
    %74 = vector.load %arg3[%c2_44, %c0_45, %c0_46] : memref<4x1x128xf32, #tpu.memory_space<vmem>>, vector<1x1x128xf32>
    %75 = vector.shape_cast %74 : vector<1x1x128xf32> to vector<1x128xf32>
    %76 = vector.broadcast %75 : vector<1x128xf32> to vector<8x128xf32>
    %77 = arith.addf %73, %76 : vector<8x128xf32>
    %cst_47 = arith.constant dense<0.000000e+00> : vector<8xf32>
    %78 = vector.multi_reduction <add>, %77, %cst_47 [1] : vector<8x128xf32> to vector<8xf32>
    %79 = vector.shape_cast %78 : vector<8xf32> to vector<8x1xf32>
    %cst_48 = arith.constant 1.562500e-02 : f32
    %80 = vector.broadcast %cst_48 : f32 to vector<8x1xf32>
    %81 = arith.mulf %79, %80 : vector<8x1xf32>
    %82 = arith.mulf %77, %77 : vector<8x128xf32>
    %cst_49 = arith.constant dense<0.000000e+00> : vector<8xf32>
    %83 = vector.multi_reduction <add>, %82, %cst_49 [1] : vector<8x128xf32> to vector<8xf32>
    %84 = vector.shape_cast %83 : vector<8xf32> to vector<8x1xf32>
    %cst_50 = arith.constant 1.562500e-02 : f32
    %85 = vector.broadcast %cst_50 : f32 to vector<8x1xf32>
    %86 = arith.mulf %84, %85 : vector<8x1xf32>
    %87 = arith.mulf %81, %81 : vector<8x1xf32>
    %88 = arith.subf %86, %87 : vector<8x1xf32>
    %89 = vector.broadcast %81 : vector<8x1xf32> to vector<8x128xf32>
    %90 = arith.subf %77, %89 : vector<8x128xf32>
    %cst_51 = arith.constant 9.99999974E-6 : f32
    %91 = vector.broadcast %cst_51 : f32 to vector<8x1xf32>
    %92 = arith.addf %88, %91 : vector<8x1xf32>
    %93 = math.rsqrt %92 : vector<8x1xf32>
    %94 = vector.broadcast %93 : vector<8x1xf32> to vector<8x128xf32>
    %95 = arith.mulf %90, %94 : vector<8x128xf32>
    %c2_52 = arith.constant 2 : index
    %c0_53 = arith.constant 0 : index
    %c0_54 = arith.constant 0 : index
    %c0_55 = arith.constant 0 : index
    %96 = vector.load %arg4[%c2_52, %c0_53, %c0_54, %c0_55] : memref<3x2x1x128xf32, #tpu.memory_space<vmem>>, vector<1x1x1x128xf32>
    %97 = vector.shape_cast %96 : vector<1x1x1x128xf32> to vector<1x128xf32>
    %98 = vector.broadcast %97 : vector<1x128xf32> to vector<8x128xf32>
    %99 = arith.mulf %95, %98 : vector<8x128xf32>
    %c2_56 = arith.constant 2 : index
    %c1_57 = arith.constant 1 : index
    %c0_58 = arith.constant 0 : index
    %c0_59 = arith.constant 0 : index
    %100 = vector.load %arg4[%c2_56, %c1_57, %c0_58, %c0_59] : memref<3x2x1x128xf32, #tpu.memory_space<vmem>>, vector<1x1x1x128xf32>
    %101 = vector.shape_cast %100 : vector<1x1x1x128xf32> to vector<1x128xf32>
    %102 = vector.broadcast %101 : vector<1x128xf32> to vector<8x128xf32>
    %103 = arith.addf %99, %102 : vector<8x128xf32>
    %cst_60 = arith.constant 0.000000e+00 : f32
    %104 = vector.broadcast %cst_60 : f32 to vector<8x128xf32>
    %105 = arith.maximumf %103, %104 : vector<8x128xf32>
    %c3 = arith.constant 3 : index
    %c0_61 = arith.constant 0 : index
    %c0_62 = arith.constant 0 : index
    %106 = vector.load %arg2[%c3, %c0_61, %c0_62] : memref<4x128x128xf32, #tpu.memory_space<vmem>>, vector<1x128x128xf32>
    %107 = vector.shape_cast %106 : vector<1x128x128xf32> to vector<128x128xf32>
    %cst_63 = arith.constant dense<0.000000e+00> : vector<8x128xf32>
    %108 = tpu.matmul %105, %107, %cst_63 {dimension_numbers = #tpu.dot_dimension_numbers<[1], [0], [0], [1], [0, 0, 1, 1], [], []>} : vector<8x128xf32>, vector<128x128xf32>, vector<8x128xf32> -> vector<8x128xf32>
    %109 = vector.extract_strided_slice %108 {offsets = [0, 0], sizes = [8, 32], strides = [1, 1]} : vector<8x128xf32> to vector<8x32xf32>
    %c3_64 = arith.constant 3 : index
    %c0_65 = arith.constant 0 : index
    %c0_66 = arith.constant 0 : index
    %110 = vector.load %arg3[%c3_64, %c0_65, %c0_66] : memref<4x1x128xf32, #tpu.memory_space<vmem>>, vector<1x1x32xf32>
    %111 = vector.shape_cast %110 : vector<1x1x32xf32> to vector<1x32xf32>
    %112 = vector.broadcast %111 : vector<1x32xf32> to vector<8x32xf32>
    %113 = arith.addf %109, %112 : vector<8x32xf32>
    %114 = arith.addf %0, %113 : vector<8x32xf32>
    %c0_67 = arith.constant 0 : index
    %c0_68 = arith.constant 0 : index
    %115 = vector.load %arg5[%c0_67, %c0_68] : memref<8x32xf32, #tpu.memory_space<vmem>>, vector<8x32xf32>
    tpu.vector_store %arg5[%c0_67, %c0_68], %114 {strides = array<i32>} : memref<8x32xf32, #tpu.memory_space<vmem>>, vector<8x32xf32>,
    return
  }
  func.func @transform_0(%arg0: i32) -> (i32, i32) {
    %c0_i32 = arith.constant 0 : i32
    %c0_i32_0 = arith.constant 0 : i32
    return %arg0, %c0_i32 : i32, i32
  }
  func.func @transform_1(%arg0: i32) -> (i32, i32, i32) {
    %c0_i32 = arith.constant 0 : i32
    %c0_i32_0 = arith.constant 0 : i32
    %c0_i32_1 = arith.constant 0 : i32
    %c0_i32_2 = arith.constant 0 : i32
    return %c0_i32, %c0_i32_0, %c0_i32_1 : i32, i32, i32
  }
  func.func @transform_2(%arg0: i32) -> (i32, i32, i32) {
    %c0_i32 = arith.constant 0 : i32
    %c0_i32_0 = arith.constant 0 : i32
    %c0_i32_1 = arith.constant 0 : i32
    %c0_i32_2 = arith.constant 0 : i32
    return %c0_i32, %c0_i32_0, %c0_i32_1 : i32, i32, i32
  }
  func.func @transform_3(%arg0: i32) -> (i32, i32, i32, i32) {
    %c0_i32 = arith.constant 0 : i32
    %c0_i32_0 = arith.constant 0 : i32
    %c0_i32_1 = arith.constant 0 : i32
    %c0_i32_2 = arith.constant 0 : i32
    %c0_i32_3 = arith.constant 0 : i32
    return %c0_i32, %c0_i32_0, %c0_i32_1, %c0_i32_2 : i32, i32, i32, i32
  }
  func.func @transform_4(%arg0: i32) -> (i32, i32) {
    %c0_i32 = arith.constant 0 : i32
    %c0_i32_0 = arith.constant 0 : i32
    return %arg0, %c0_i32 : i32, i32
  }
}

module attributes {stable_mosaic.version = 11 : i64} {
  func.func @_resmlp_kernel(%arg0: i32, %arg1: memref<8x32xf32, #tpu.memory_space<vmem>>, %arg2: memref<4x128x128xf32, #tpu.memory_space<vmem>>, %arg3: memref<4x1x128xf32, #tpu.memory_space<vmem>>, %arg4: memref<3x2x1x128xf32, #tpu.memory_space<vmem>>, %arg5: memref<8x32xf32, #tpu.memory_space<vmem>>) attributes {dimension_semantics = [#tpu.dimension_semantics<parallel>], iteration_bounds = array<i64: 1>, scalar_prefetch = 0 : i64, scratch_operands = 0 : i64, tpu.core_type = #tpu.core_type<tc>, window_params = [{transform_indices = @transform_0, window_bounds = array<i64: 8, 32>}, {pipeline_mode = #tpu.pipeline_mode<synchronous>, transform_indices = @transform_1, window_bounds = array<i64: 4, 128, 128>}, {pipeline_mode = #tpu.pipeline_mode<synchronous>, transform_indices = @transform_2, window_bounds = array<i64: 4, 1, 128>}, {pipeline_mode = #tpu.pipeline_mode<synchronous>, transform_indices = @transform_3, window_bounds = array<i64: 3, 2, 1, 128>}, {transform_indices = @transform_4, window_bounds = array<i64: 8, 32>}]} {
    %c0 = arith.constant 0 : index
    %c0_0 = arith.constant 0 : index
    %0 = vector.load %arg1[%c0, %c0_0] : memref<8x32xf32, #tpu.memory_space<vmem>>, vector<8x32xf32>
    %c0_1 = arith.constant 0 : index
    %c0_2 = arith.constant 0 : index
    %c0_3 = arith.constant 0 : index
    %1 = vector.load %arg2[%c0_1, %c0_2, %c0_3] : memref<4x128x128xf32, #tpu.memory_space<vmem>>, vector<1x32x128xf32>
    %2 = vector.shape_cast %1 : vector<1x32x128xf32> to vector<32x128xf32>
    %cst = arith.constant dense<0.000000e+00> : vector<8x128xf32>
    %3 = tpu.matmul %0, %2, %cst {dimension_numbers = #tpu.dot_dimension_numbers<[1], [0], [0], [1], [0, 0, 1, 1], [], []>} : vector<8x32xf32>, vector<32x128xf32>, vector<8x128xf32> -> vector<8x128xf32>
    %c0_4 = arith.constant 0 : index
    %c0_5 = arith.constant 0 : index
    %c0_6 = arith.constant 0 : index
    %4 = vector.load %arg3[%c0_4, %c0_5, %c0_6] : memref<4x1x128xf32, #tpu.memory_space<vmem>>, vector<1x1x128xf32>
    %5 = vector.shape_cast %4 : vector<1x1x128xf32> to vector<1x128xf32>
    %6 = vector.broadcast %5 : vector<1x128xf32> to vector<8x128xf32>
    %7 = arith.addf %3, %6 : vector<8x128xf32>
    %cst_7 = arith.constant dense<0.000000e+00> : vector<8xf32>
    %8 = vector.multi_reduction <add>, %7, %cst_7 [1] : vector<8x128xf32> to vector<8xf32>
    %9 = vector.shape_cast %8 : vector<8xf32> to vector<8x1xf32>
    %cst_8 = arith.constant 1.562500e-02 : f32
    %10 = vector.broadcast %cst_8 : f32 to vector<8x1xf32>
    %11 = arith.mulf %9, %10 : vector<8x1xf32>
    %12 = arith.mulf %7, %7 : vector<8x128xf32>
    %cst_9 = arith.constant dense<0.000000e+00> : vector<8xf32>
    %13 = vector.multi_reduction <add>, %12, %cst_9 [1] : vector<8x128xf32> to vector<8xf32>
    %14 = vector.shape_cast %13 : vector<8xf32> to vector<8x1xf32>
    %cst_10 = arith.constant 1.562500e-02 : f32
    %15 = vector.broadcast %cst_10 : f32 to vector<8x1xf32>
    %16 = arith.mulf %14, %15 : vector<8x1xf32>
    %17 = arith.mulf %11, %11 : vector<8x1xf32>
    %18 = arith.subf %16, %17 : vector<8x1xf32>
    %19 = vector.broadcast %11 : vector<8x1xf32> to vector<8x128xf32>
    %20 = arith.subf %7, %19 : vector<8x128xf32>
    %cst_11 = arith.constant 9.99999974E-6 : f32
    %21 = vector.broadcast %cst_11 : f32 to vector<8x1xf32>
    %22 = arith.addf %18, %21 : vector<8x1xf32>
    %23 = math.rsqrt %22 : vector<8x1xf32>
    %24 = vector.broadcast %23 : vector<8x1xf32> to vector<8x128xf32>
    %25 = arith.mulf %20, %24 : vector<8x128xf32>
    %c0_12 = arith.constant 0 : index
    %c0_13 = arith.constant 0 : index
    %c0_14 = arith.constant 0 : index
    %c0_15 = arith.constant 0 : index
    %26 = vector.load %arg4[%c0_12, %c0_13, %c0_14, %c0_15] : memref<3x2x1x128xf32, #tpu.memory_space<vmem>>, vector<1x1x1x128xf32>
    %27 = vector.shape_cast %26 : vector<1x1x1x128xf32> to vector<1x128xf32>
    %28 = vector.broadcast %27 : vector<1x128xf32> to vector<8x128xf32>
    %29 = arith.mulf %25, %28 : vector<8x128xf32>
    %c0_16 = arith.constant 0 : index
    %c1 = arith.constant 1 : index
    %c0_17 = arith.constant 0 : index
    %c0_18 = arith.constant 0 : index
    %30 = vector.load %arg4[%c0_16, %c1, %c0_17, %c0_18] : memref<3x2x1x128xf32, #tpu.memory_space<vmem>>, vector<1x1x1x128xf32>
    %31 = vector.shape_cast %30 : vector<1x1x1x128xf32> to vector<1x128xf32>
    %32 = vector.broadcast %31 : vector<1x128xf32> to vector<8x128xf32>
    %33 = arith.addf %29, %32 : vector<8x128xf32>
    %cst_19 = arith.constant 0.000000e+00 : f32
    %34 = vector.broadcast %cst_19 : f32 to vector<8x128xf32>
    %35 = arith.maximumf %33, %34 : vector<8x128xf32>
    %c1_20 = arith.constant 1 : index
    %c0_21 = arith.constant 0 : index
    %c0_22 = arith.constant 0 : index
    %36 = vector.load %arg2[%c1_20, %c0_21, %c0_22] : memref<4x128x128xf32, #tpu.memory_space<vmem>>, vector<1x128x128xf32>
    %37 = vector.shape_cast %36 : vector<1x128x128xf32> to vector<128x128xf32>
    %cst_23 = arith.constant dense<0.000000e+00> : vector<8x128xf32>
    %38 = tpu.matmul %35, %37, %cst_23 {dimension_numbers = #tpu.dot_dimension_numbers<[1], [0], [0], [1], [0, 0, 1, 1], [], []>} : vector<8x128xf32>, vector<128x128xf32>, vector<8x128xf32> -> vector<8x128xf32>
    %c1_24 = arith.constant 1 : index
    %c0_25 = arith.constant 0 : index
    %c0_26 = arith.constant 0 : index
    %39 = vector.load %arg3[%c1_24, %c0_25, %c0_26] : memref<4x1x128xf32, #tpu.memory_space<vmem>>, vector<1x1x128xf32>
    %40 = vector.shape_cast %39 : vector<1x1x128xf32> to vector<1x128xf32>
    %41 = vector.broadcast %40 : vector<1x128xf32> to vector<8x128xf32>
    %42 = arith.addf %38, %41 : vector<8x128xf32>
    %cst_27 = arith.constant dense<0.000000e+00> : vector<8xf32>
    %43 = vector.multi_reduction <add>, %42, %cst_27 [1] : vector<8x128xf32> to vector<8xf32>
    %44 = vector.shape_cast %43 : vector<8xf32> to vector<8x1xf32>
    %cst_28 = arith.constant 1.562500e-02 : f32
    %45 = vector.broadcast %cst_28 : f32 to vector<8x1xf32>
    %46 = arith.mulf %44, %45 : vector<8x1xf32>
    %47 = arith.mulf %42, %42 : vector<8x128xf32>
    %cst_29 = arith.constant dense<0.000000e+00> : vector<8xf32>
    %48 = vector.multi_reduction <add>, %47, %cst_29 [1] : vector<8x128xf32> to vector<8xf32>
    %49 = vector.shape_cast %48 : vector<8xf32> to vector<8x1xf32>
    %cst_30 = arith.constant 1.562500e-02 : f32
    %50 = vector.broadcast %cst_30 : f32 to vector<8x1xf32>
    %51 = arith.mulf %49, %50 : vector<8x1xf32>
    %52 = arith.mulf %46, %46 : vector<8x1xf32>
    %53 = arith.subf %51, %52 : vector<8x1xf32>
    %54 = vector.broadcast %46 : vector<8x1xf32> to vector<8x128xf32>
    %55 = arith.subf %42, %54 : vector<8x128xf32>
    %cst_31 = arith.constant 9.99999974E-6 : f32
    %56 = vector.broadcast %cst_31 : f32 to vector<8x1xf32>
    %57 = arith.addf %53, %56 : vector<8x1xf32>
    %58 = math.rsqrt %57 : vector<8x1xf32>
    %59 = vector.broadcast %58 : vector<8x1xf32> to vector<8x128xf32>
    %60 = arith.mulf %55, %59 : vector<8x128xf32>
    %c1_32 = arith.constant 1 : index
    %c0_33 = arith.constant 0 : index
    %c0_34 = arith.constant 0 : index
    %c0_35 = arith.constant 0 : index
    %61 = vector.load %arg4[%c1_32, %c0_33, %c0_34, %c0_35] : memref<3x2x1x128xf32, #tpu.memory_space<vmem>>, vector<1x1x1x128xf32>
    %62 = vector.shape_cast %61 : vector<1x1x1x128xf32> to vector<1x128xf32>
    %63 = vector.broadcast %62 : vector<1x128xf32> to vector<8x128xf32>
    %64 = arith.mulf %60, %63 : vector<8x128xf32>
    %c1_36 = arith.constant 1 : index
    %c1_37 = arith.constant 1 : index
    %c0_38 = arith.constant 0 : index
    %c0_39 = arith.constant 0 : index
    %65 = vector.load %arg4[%c1_36, %c1_37, %c0_38, %c0_39] : memref<3x2x1x128xf32, #tpu.memory_space<vmem>>, vector<1x1x1x128xf32>
    %66 = vector.shape_cast %65 : vector<1x1x1x128xf32> to vector<1x128xf32>
    %67 = vector.broadcast %66 : vector<1x128xf32> to vector<8x128xf32>
    %68 = arith.addf %64, %67 : vector<8x128xf32>
    %cst_40 = arith.constant 0.000000e+00 : f32
    %69 = vector.broadcast %cst_40 : f32 to vector<8x128xf32>
    %70 = arith.maximumf %68, %69 : vector<8x128xf32>
    %c2 = arith.constant 2 : index
    %c0_41 = arith.constant 0 : index
    %c0_42 = arith.constant 0 : index
    %71 = vector.load %arg2[%c2, %c0_41, %c0_42] : memref<4x128x128xf32, #tpu.memory_space<vmem>>, vector<1x128x128xf32>
    %72 = vector.shape_cast %71 : vector<1x128x128xf32> to vector<128x128xf32>
    %cst_43 = arith.constant dense<0.000000e+00> : vector<8x128xf32>
    %73 = tpu.matmul %70, %72, %cst_43 {dimension_numbers = #tpu.dot_dimension_numbers<[1], [0], [0], [1], [0, 0, 1, 1], [], []>} : vector<8x128xf32>, vector<128x128xf32>, vector<8x128xf32> -> vector<8x128xf32>
    %c2_44 = arith.constant 2 : index
    %c0_45 = arith.constant 0 : index
    %c0_46 = arith.constant 0 : index
    %74 = vector.load %arg3[%c2_44, %c0_45, %c0_46] : memref<4x1x128xf32, #tpu.memory_space<vmem>>, vector<1x1x128xf32>
    %75 = vector.shape_cast %74 : vector<1x1x128xf32> to vector<1x128xf32>
    %76 = vector.broadcast %75 : vector<1x128xf32> to vector<8x128xf32>
    %77 = arith.addf %73, %76 : vector<8x128xf32>
    %cst_47 = arith.constant dense<0.000000e+00> : vector<8xf32>
    %78 = vector.multi_reduction <add>, %77, %cst_47 [1] : vector<8x128xf32> to vector<8xf32>
    %79 = vector.shape_cast %78 : vector<8xf32> to vector<8x1xf32>
    %cst_48 = arith.constant 1.562500e-02 : f32
    %80 = vector.broadcast %cst_48 : f32 to vector<8x1xf32>
    %81 = arith.mulf %79, %80 : vector<8x1xf32>
    %82 = arith.mulf %77, %77 : vector<8x128xf32>
    %cst_49 = arith.constant dense<0.000000e+00> : vector<8xf32>
    %83 = vector.multi_reduction <add>, %82, %cst_49 [1] : vector<8x128xf32> to vector<8xf32>
    %84 = vector.shape_cast %83 : vector<8xf32> to vector<8x1xf32>
    %cst_50 = arith.constant 1.562500e-02 : f32
    %85 = vector.broadcast %cst_50 : f32 to vector<8x1xf32>
    %86 = arith.mulf %84, %85 : vector<8x1xf32>
    %87 = arith.mulf %81, %81 : vector<8x1xf32>
    %88 = arith.subf %86, %87 : vector<8x1xf32>
    %89 = vector.broadcast %81 : vector<8x1xf32> to vector<8x128xf32>
    %90 = arith.subf %77, %89 : vector<8x128xf32>
    %cst_51 = arith.constant 9.99999974E-6 : f32
    %91 = vector.broadcast %cst_51 : f32 to vector<8x1xf32>
    %92 = arith.addf %88, %91 : vector<8x1xf32>
    %93 = math.rsqrt %92 : vector<8x1xf32>
    %94 = vector.broadcast %93 : vector<8x1xf32> to vector<8x128xf32>
    %95 = arith.mulf %90, %94 : vector<8x128xf32>
    %c2_52 = arith.constant 2 : index
    %c0_53 = arith.constant 0 : index
    %c0_54 = arith.constant 0 : index
    %c0_55 = arith.constant 0 : index
    %96 = vector.load %arg4[%c2_52, %c0_53, %c0_54, %c0_55] : memref<3x2x1x128xf32, #tpu.memory_space<vmem>>, vector<1x1x1x128xf32>
    %97 = vector.shape_cast %96 : vector<1x1x1x128xf32> to vector<1x128xf32>
    %98 = vector.broadcast %97 : vector<1x128xf32> to vector<8x128xf32>
    %99 = arith.mulf %95, %98 : vector<8x128xf32>
    %c2_56 = arith.constant 2 : index
    %c1_57 = arith.constant 1 : index
    %c0_58 = arith.constant 0 : index
    %c0_59 = arith.constant 0 : index
    %100 = vector.load %arg4[%c2_56, %c1_57, %c0_58, %c0_59] : memref<3x2x1x128xf32, #tpu.memory_space<vmem>>, vector<1x1x1x128xf32>
    %101 = vector.shape_cast %100 : vector<1x1x1x128xf32> to vector<1x128xf32>
    %102 = vector.broadcast %101 : vector<1x128xf32> to vector<8x128xf32>
    %103 = arith.addf %99, %102 : vector<8x128xf32>
    %cst_60 = arith.constant 0.000000e+00 : f32
    %104 = vector.broadcast %cst_60 : f32 to vector<8x128xf32>
    %105 = arith.maximumf %103, %104 : vector<8x128xf32>
    %c3 = arith.constant 3 : index
    %c0_61 = arith.constant 0 : index
    %c0_62 = arith.constant 0 : index
    %106 = vector.load %arg2[%c3, %c0_61, %c0_62] : memref<4x128x128xf32, #tpu.memory_space<vmem>>, vector<1x128x128xf32>
    %107 = vector.shape_cast %106 : vector<1x128x128xf32> to vector<128x128xf32>
    %cst_63 = arith.constant dense<0.000000e+00> : vector<8x128xf32>
    %108 = tpu.matmul %105, %107, %cst_63 {dimension_numbers = #tpu.dot_dimension_numbers<[1], [0], [0], [1], [0, 0, 1, 1], [], []>} : vector<8x128xf32>, vector<128x128xf32>, vector<8x128xf32> -> vector<8x128xf32>
    %109 = vector.extract_strided_slice %108 {offsets = [0, 0], sizes = [8, 32], strides = [1, 1]} : vector<8x128xf32> to vector<8x32xf32>
    %c3_64 = arith.constant 3 : index
    %c0_65 = arith.constant 0 : index
    %c0_66 = arith.constant 0 : index
    %110 = vector.load %arg3[%c3_64, %c0_65, %c0_66] : memref<4x1x128xf32, #tpu.memory_space<vmem>>, vector<1x1x32xf32>
    %111 = vector.shape_cast %110 : vector<1x1x32xf32> to vector<1x32xf32>
    %112 = vector.broadcast %111 : vector<1x32xf32> to vector<8x32xf32>
    %113 = arith.addf %109, %112 : vector<8x32xf32>
    %114 = arith.addf %0, %113 : vector<8x32xf32>
    %c0_67 = arith.constant 0 : index
    %c0_68 = arith.constant 0 : index
    %115 = vector.load %arg5[%c0_67, %c0_68] : memref<8x32xf32, #tpu.memory_space<vmem>>, vector<8x32xf32>
    tpu.vector_store %arg5[%c0_67, %c0_68], %114 {strides = array<i32>} : memref<8x32xf32, #tpu.memory_space<vmem>>, vector<8x32xf32>,
    return
  }
  func.func @transform_0(%arg0: i32) -> (i32, i32) {
    %c0_i32 = arith.constant 0 : i32
    %c0_i32_0 = arith.constant 0 : i32
    return %arg0, %c0_i32 : i32, i32
  }
  func.func @transform_1(%arg0: i32) -> (i32, i32, i32) {
    %c0_i32 = arith.constant 0 : i32
    %c0_i32_0 = arith.constant 0 : i32
    %c0_i32_1 = arith.constant 0 : i32
    %c0_i32_2 = arith.constant 0 : i32
    return %c0_i32, %c0_i32_0, %c0_i32_1 : i32, i32, i32
  }
  func.func @transform_2(%arg0: i32) -> (i32, i32, i32) {
    %c0_i32 = arith.constant 0 : i32
    %c0_i32_0 = arith.constant 0 : i32
    %c0_i32_1 = arith.constant 0 : i32
    %c0_i32_2 = arith.constant 0 : i32
    return %c0_i32, %c0_i32_0, %c0_i32_1 : i32, i32, i32
  }
  func.func @transform_3(%arg0: i32) -> (i32, i32, i32, i32) {
    %c0_i32 = arith.constant 0 : i32
    %c0_i32_0 = arith.constant 0 : i32
    %c0_i32_1 = arith.constant 0 : i32
    %c0_i32_2 = arith.constant 0 : i32
    %c0_i32_3 = arith.constant 0 : i32
    return %c0_i32, %c0_i32_0, %c0_i32_1, %c0_i32_2 : i32, i32, i32, i32
  }
  func.func @transform_4(%arg0: i32) -> (i32, i32) {
    %c0_i32 = arith.constant 0 : i32
    %c0_i32_0 = arith.constant 0 : i32
    return %arg0, %c0_i32 : i32, i32
  }
}

</mosaic_0001>

<bundles_post_ra>
// kernel: tpu_custom_call.1
= control target key start
LH: loop header
LB: loop body
LE: loop exit
PB: predicated region body
PF: predicated region fallthrough
CT: control target
= control target key end

     0   :  { %9 = vsyncpa [#allocation3], 0  ;;  %s573_s0 = inlined_call_operand.hbm [shape: f32[8,32], index: 0, kind: input, shape index: {}]   ;;  %s574_s1 = inlined_call_operand.hbm [shape: f32[4,128,128], index: 1, kind: input, shape index: {}]   ;;  %s575_s2 = inlined_call_operand.hbm [shape: f32[4,1,128], index: 2, kind: input, shape index: {}]   ;;  %s576_s3 = inlined_call_operand.hbm [shape: f32[3,2,1,128], index: 3, kind: input, shape index: {}]   ;;  %s577_s4 = inlined_call_operand.hbm [shape: f32[8,32], index: 4, kind: output, shape index: {}]  }
   0x1   :  { %10 = vsyncpa [#allocation6], 0 }
   0x2   :  { %11 = vsyncpa [#allocation9], 0  ;;  %s28_s17 = sshll.u32 %s574_s1, 4  ;;  %s29_s17 = int_to_ptr.hbm [resolvable:$true] %s28_s17 }
   0x3   :  { %12 = vsyncpa [#allocation4], 0  ;;  %s518_s18 = smov [#allocation5]   ;;  %s18_s22 = sshll.u32 %s573_s0, 4  ;;  %s19_s22 = int_to_ptr.hbm [resolvable:$true] %s18_s22 }
   0x4   :  { %s30_s19 = sshll.u32 %s518_s18, 4  ;;  %s519_s23 = smov 128   ;;  %s31_s19 = int_to_ptr.vmem [resolvable:$true] %s30_s19 }
   0x5   :  { %s520_s24 = smov 8   ;;  %s521_s25 = smov [#allocation2]  }
   0x6   :  { %36 = dma.hbm_to_vmem [thread:$0]  %s29_s17, 8192, %s31_s19, [#allocation6], %s519_s23, %s519_s23, %s520_s24  }
   0x7   :  { %s20_s26 = sshll.u32 %s521_s25, 4  ;;  %s41_s29 = sshll.u32 %s575_s2, 4  ;;  %s21_s26 = int_to_ptr.vmem [resolvable:$true] %s20_s26  ;;  %s42_s29 = int_to_ptr.hbm [resolvable:$true] %s41_s29 }
   0x8   :  { %23 = dma.hbm_to_vmem [thread:$0]  %s19_s22, 128, %s21_s26, [#allocation3]  }
   0x9   :  { %s522_s1 = smov [#allocation7]   ;;  %s54_s0 = sshll.u32 %s576_s3, 4  ;;  %s55_s0 = int_to_ptr.hbm [resolvable:$true] %s54_s0 }
   0xa   :  { %s43_s30 = sshll.u32 %s522_s1, 4  ;;  %s523_s7 = smov 16   ;;  %s44_s30 = int_to_ptr.vmem [resolvable:$true] %s43_s30 }
   0xb   :  { %s524_s8 = smov 1   ;;  %s525_s9 = smov [#allocation8]  }
   0xc   :  { %49 = dma.hbm_to_vmem [thread:$0]  %s42_s29, 64, %s44_s30, [#allocation6], %s523_s7, %s523_s7, %s524_s8  }
   0xd   :  { %s56_s10 = sshll.u32 %s525_s9, 4  ;;  %s57_s10 = int_to_ptr.vmem [resolvable:$true] %s56_s10 }
   0xe   :  { %62 = dma.hbm_to_vmem [thread:$0]  %s55_s0, 96, %s57_s10, [#allocation9], %s523_s7, %s523_s7, %s524_s8  }
   0xf   :  { %510 = dma.done.wait [#allocation3], 128  }
  0x10   :  { %511 = vsyncadd [#allocation3], 4294967168 }
  0x11   :  { %512 = dma.done.wait [#allocation6], 8256  }
  0x12   :  { %513 = vsyncadd [#allocation6], 4294959040 }
  0x13   :  { %514 = dma.done.wait [#allocation9], 96  }
  0x14   :  { %515 = vsyncadd [#allocation9], 4294967200  ;;  %v83_v0 = vld [vmem:[#allocation5 + $0x18] sm:$0xff]  ;;  %v82_v1 = vld [vmem:[#allocation5 + $0x10] sm:$0xff]  ;;  %vm88_vm0 = vcmask 261120   ;;  %s526_s2 = smov [#allocation10]  }
  0x15   :  { %104 = vmatpush.msra.mxu0 %v83_v0  ;;  %v81_v2 = vld [vmem:[#allocation5 + $0x8] sm:$0xff]  ;;  %v80_v3 = vld [vmem:[#allocation5] sm:$0xff]  ;;  %v564_v4 = vld [vmem:[#allocation2] sm:$0xff]  ;;  %s350_s3 = sshll.u32 %s526_s2, 4  ;;  %s352_s13 = sshll.u32 %s577_s4, 4  ;;  %s351_s3 = int_to_ptr.vmem [resolvable:$true] %s350_s3  ;;  %s353_s13 = int_to_ptr.hbm [resolvable:$true] %s352_s13 }
  0x16   :  { %v374_v5 = vld [vmem:[#allocation7] ss:$0 sm:$0xff]  ;;  %v162_v9 = vld [vmem:[#allocation5 + $0xf8] sm:$0xff]  ;;  %v161_v10 = vld [vmem:[#allocation5 + $0xf0] sm:$0xff] }
  0x17   :  { %105 = vmatpush.msra.mxu0 %v82_v1  ;;  %168 = vmatpush.msra.mxu1 %v162_v9  ;;  %v160_v11 = vld [vmem:[#allocation5 + $0xe8] sm:$0xff]  ;;  %v159_v12 = vld [vmem:[#allocation5 + $0xe0] sm:$0xff]  ;;  %v158_v13 = vld [vmem:[#allocation5 + $0xd8] sm:$0xff] }
  0x18   :  { %v157_v14 = vld [vmem:[#allocation5 + $0xd0] sm:$0xff]  ;;  %v156_v15 = vld [vmem:[#allocation5 + $0xc8] sm:$0xff]  ;;  %v155_v16 = vld [vmem:[#allocation5 + $0xc0] sm:$0xff] }
  0x19   :  { %106 = vmatpush.msra.mxu0 %v81_v2  ;;  %169 = vmatpush.msra.mxu1 %v161_v10  ;;  %v154_v17 = vld [vmem:[#allocation5 + $0xb8] sm:$0xff]  ;;  %v153_v18 = vld [vmem:[#allocation5 + $0xb0] sm:$0xff]  ;;  %v152_v19 = vld [vmem:[#allocation5 + $0xa8] sm:$0xff] }
  0x1a   :  { %v151_v20 = vld [vmem:[#allocation5 + $0xa0] sm:$0xff]  ;;  %v150_v21 = vld [vmem:[#allocation5 + $0x98] sm:$0xff]  ;;  %v149_v23 = vld [vmem:[#allocation5 + $0x90] sm:$0xff] }
  0x1b   :  { %107 = vmatpush.msra.mxu0 %v80_v3  ;;  %170 = vmatpush.msra.mxu1 %v160_v11  ;;  %v148_v24 = vld [vmem:[#allocation5 + $0x88] sm:$0xff]  ;;  %v147_v26 = vld [vmem:[#allocation5 + $0x80] sm:$0xff]  ;;  %v239_v50 = vld [vmem:[#allocation5 + $0x178] sm:$0xff] }
  0x1c   :  { %364 = vmatmul.msk.f32.vlgmr.msra.gmra.mxu0 %vm88_vm0, %v564_v4  ;;  %v375_v39 = vld [vmem:[#allocation8] ss:$0 sm:$0xff]  ;;  %v376_v42 = vld [vmem:[#allocation8 + $0x1] ss:$0 sm:$0xff]  ;;  %v377_v46 = vld [vmem:[#allocation7 + $0x1] ss:$0 sm:$0xff]  ;;  %245 = vmatpush.msra.mxu2 %v239_v50 }
  0x1d   :  { %171 = vmatpush.msra.mxu1 %v159_v12  ;;  %v238_v51 = vld [vmem:[#allocation5 + $0x170] sm:$0xff]  ;;  %v237_v52 = vld [vmem:[#allocation5 + $0x168] sm:$0xff]  ;;  %v236_v53 = vld [vmem:[#allocation5 + $0x160] sm:$0xff] }
  0x1e   :  { %246 = vmatpush.msra.mxu2 %v238_v51  ;;  %v235_v54 = vld [vmem:[#allocation5 + $0x158] sm:$0xff]  ;;  %v234_v55 = vld [vmem:[#allocation5 + $0x150] sm:$0xff]  ;;  %v233_v56 = vld [vmem:[#allocation5 + $0x148] sm:$0xff] }
  0x1f   :  { %172 = vmatpush.msra.mxu1 %v158_v13  ;;  %v232_v57 = vld [vmem:[#allocation5 + $0x140] sm:$0xff]  ;;  %v231_v58 = vld [vmem:[#allocation5 + $0x138] sm:$0xff]  ;;  %v230_v59 = vld [vmem:[#allocation5 + $0x130] sm:$0xff] }
  0x20   :  { %247 = vmatpush.msra.mxu2 %v237_v52  ;;  %v229_v60 = vld [vmem:[#allocation5 + $0x128] sm:$0xff]  ;;  %v228_v61 = vld [vmem:[#allocation5 + $0x120] sm:$0xff]  ;;  %v227_v62 = vld [vmem:[#allocation5 + $0x118] sm:$0xff] }
  0x21   :  { %173 = vmatpush.msra.mxu1 %v157_v14  ;;  %v226_v0 = vld [vmem:[#allocation5 + $0x110] sm:$0xff]  ;;  %v225_v1 = vld [vmem:[#allocation5 + $0x108] sm:$0xff]  ;;  %v224_v3 = vld [vmem:[#allocation5 + $0x100] sm:$0xff] }
  0x22   :  { %248 = vmatpush.msra.mxu2 %v236_v53 }
  0x23   :  { %174 = vmatpush.msra.mxu1 %v156_v15 }
  0x24   :  { %249 = vmatpush.msra.mxu2 %v235_v54 }
  0x25   :  { %175 = vmatpush.msra.mxu1 %v155_v16 }
  0x26   :  { %250 = vmatpush.msra.mxu2 %v234_v55 }
  0x27   :  { %176 = vmatpush.msra.mxu1 %v154_v17  ;;  %v378_v17 = vld [vmem:[#allocation8 + $0x2] ss:$0 sm:$0xff] }
  0x28   :  { %251 = vmatpush.msra.mxu2 %v233_v56 }
  0x29   :  { %177 = vmatpush.msra.mxu1 %v153_v18 }
  0x2a   :  { %252 = vmatpush.msra.mxu2 %v232_v57 }
  0x2b   :  { %178 = vmatpush.msra.mxu1 %v152_v19 }
  0x2c   :  { %253 = vmatpush.msra.mxu2 %v231_v58  ;;  %v381_v58 = vld [vmem:[#allocation8 + $0x4] ss:$0 sm:$0xff] }
  0x2d   :  { %179 = vmatpush.msra.mxu1 %v151_v20  ;;  %v379_v20 = vld [vmem:[#allocation8 + $0x3] ss:$0 sm:$0xff] }
  0x2e   :  { %254 = vmatpush.msra.mxu2 %v230_v59 }
  0x2f   :  { %180 = vmatpush.msra.mxu1 %v150_v21 }
  0x30   :  { %255 = vmatpush.msra.mxu2 %v229_v60 }
  0x31   :  { %181 = vmatpush.msra.mxu1 %v149_v23 }
  0x32   :  { %256 = vmatpush.msra.mxu2 %v228_v61  ;;  %v382_v61 = vld [vmem:[#allocation8 + $0x5] ss:$0 sm:$0xff] }
  0x33   :  { %182 = vmatpush.msra.mxu1 %v148_v24  ;;  %v380_v24 = vld [vmem:[#allocation7 + $0x2] ss:$0 sm:$0xff] }
  0x34   :  { %257 = vmatpush.msra.mxu2 %v227_v62 }
  0x35   :  { %183 = vmatpush.msra.mxu1 %v147_v26 }
  0x36   :  { %258 = vmatpush.msra.mxu2 %v226_v0 }
  0x38   :  { %259 = vmatpush.msra.mxu2 %v225_v1  ;;  %v383_v1 = vld [vmem:[#allocation7 + $0x3] ss:$0 sm:$0xff] }
  0x3a   :  { %260 = vmatpush.msra.mxu2 %v224_v3 }
  0x99   :  { %v109_v6 = vpop.f32.mrf.mxu0 }
  0x9a   :  { %v110_v7 = vadd.f32 %v374_v5, %v109_v6 }
  0x9c   :  { %112 = vadd.xlane.f32.xlu0 %v110_v7  ;;  %v115_v8 = vmul.f32 %v110_v7, %v110_v7 }
  0xa4   :  { %116 = vadd.xlane.f32.xlu0 %v115_v8 }
 0x10f   :  { %v113_v22 = vpop.xlane.xlu0 %112 }
 0x110   :  { %v114_v25 = vmul.f32 0.015625, %v113_v22 }
 0x112   :  { %v119_v28 = vmul.f32 %v114_v25, %v114_v25  ;;  %v121_v38 = vsub.f32 %v110_v7, %v114_v25 }
 0x117   :  { %v117_v27 = vpop.xlane.xlu0 %116 }
 0x118   :  { %v118_v29 = vmul.f32 0.015625, %v117_v27 }
 0x11a   :  { %v120_v30 = vsub.f32 %v118_v29, %v119_v28  ;;  %v316_v28 = vld [vmem:[#allocation5 + $0x1f8] sm:$0xff]  ;;  %v315_v29 = vld [vmem:[#allocation5 + $0x1f0] sm:$0xff] }
 0x11b   :  { %317 = vmatpush.msra.mxu3 %v316_v28 }
 0x11c   :  { %v122_v31 = vadd.f32 1e-05, %v120_v30  ;;  %v314_v30 = vld [vmem:[#allocation5 + $0x1e8] sm:$0xff] }
 0x11d   :  { %318 = vmatpush.msra.mxu3 %v315_v29 }
 0x11e   :  { %384 = vrsqrt.f32 %v122_v31  ;;  %vm129_vm2 = vweird.f32 %v122_v31 }
 0x11f   :  { %319 = vmatpush.msra.mxu3 %v314_v30 }
 0x124   :  { %v385_v32 = vpop.eup %384 }
 0x125   :  { %v124_v33 = vmul.f32 %v385_v32, %v122_v31  ;;  %vm130_vm1 = vweird.f32 %v385_v32  ;;  %v313_v31 = vld [vmem:[#allocation5 + $0x1e0] sm:$0xff] }
 0x126   :  { %vm131_vm3 = vmor %vm129_vm2, %vm130_vm1  ;;  %320 = vmatpush.msra.mxu3 %v313_v31 }
 0x127   :  { %v125_v34 = vmul.f32 %v385_v32, %v124_v33  ;;  %v311_v33 = vld [vmem:[#allocation5 + $0x1d0] sm:$0xff] }
 0x129   :  { %v126_v35 = vmul.f32 0.5, %v125_v34  ;;  %v310_v34 = vld [vmem:[#allocation5 + $0x1c8] sm:$0xff] }
 0x12b   :  { %v127_v36 = vsub.f32 1.5, %v126_v35  ;;  %v309_v35 = vld [vmem:[#allocation5 + $0x1c0] sm:$0xff] }
 0x12d   :  { %v128_v37 = vmul.f32 %v385_v32, %v127_v36  ;;  %v308_v36 = vld [vmem:[#allocation5 + $0x1b8] sm:$0xff] }
 0x12f   :  { %v132_v40 = vsel %vm131_vm3, %v385_v32, %v128_v37  ;;  %v312_v32 = vld [vmem:[#allocation5 + $0x1d8] sm:$0xff]  ;;  %v307_v37 = vld [vmem:[#allocation5 + $0x1b0] sm:$0xff] }
 0x130   :  { %v133_v41 = vmul.f32 %v132_v40, %v121_v38  ;;  %321 = vmatpush.msra.mxu3 %v312_v32  ;;  %v306_v38 = vld [vmem:[#allocation5 + $0x1a8] sm:$0xff]  ;;  %v304_v40 = vld [vmem:[#allocation5 + $0x198] sm:$0xff] }
 0x132   :  { %v138_v43 = vmul.f32 %v375_v39, %v133_v41  ;;  %322 = vmatpush.msra.mxu3 %v311_v33  ;;  %v305_v39 = vld [vmem:[#allocation5 + $0x1a0] sm:$0xff] }
 0x134   :  { %v144_v44 = vadd.f32 %v376_v42, %v138_v43  ;;  %323 = vmatpush.msra.mxu3 %v310_v34  ;;  %v303_v42 = vld [vmem:[#allocation5 + $0x190] sm:$0xff]  ;;  %v302_v43 = vld [vmem:[#allocation5 + $0x188] sm:$0xff] }
 0x136   :  { %v145_v45 = vmax.f32 %v144_v44, 0.0  ;;  %324 = vmatpush.msra.mxu3 %v309_v35 }
 0x138   :  { %184 = vmatmul.f32.vlgmr.msra.gmra.mxu1 %v145_v45  ;;  %325 = vmatpush.msra.mxu3 %v308_v36  ;;  %v301_v45 = vld [vmem:[#allocation5 + $0x180] sm:$0xff] }
 0x13a   :  { %326 = vmatpush.msra.mxu3 %v307_v37 }
 0x13c   :  { %327 = vmatpush.msra.mxu3 %v306_v38 }
 0x13e   :  { %328 = vmatpush.msra.mxu3 %v305_v39 }
 0x140   :  { %329 = vmatpush.msra.mxu3 %v304_v40 }
 0x142   :  { %330 = vmatpush.msra.mxu3 %v303_v42 }
 0x144   :  { %331 = vmatpush.msra.mxu3 %v302_v43 }
 0x146   :  { %332 = vmatpush.msra.mxu3 %v301_v45 }
 0x1b5   :  { %v185_v47 = vpop.f32.mrf.mxu1 }
 0x1b6   :  { %v186_v48 = vadd.f32 %v377_v46, %v185_v47 }
 0x1b8   :  { %188 = vadd.xlane.f32.xlu1 %v186_v48  ;;  %v191_v49 = vmul.f32 %v186_v48, %v186_v48 }
 0x1c0   :  { %192 = vadd.xlane.f32.xlu1 %v191_v49 }
 0x22b   :  { %v189_v63 = vpop.xlane.xlu1 %188 }
 0x22c   :  { %v190_v2 = vmul.f32 0.015625, %v189_v63 }
 0x22e   :  { %v195_v6 = vmul.f32 %v190_v2, %v190_v2  ;;  %v197_v16 = vsub.f32 %v186_v48, %v190_v2 }
 0x233   :  { %v193_v5 = vpop.xlane.xlu1 %192 }
 0x234   :  { %v194_v7 = vmul.f32 0.015625, %v193_v5 }
 0x236   :  { %v196_v8 = vsub.f32 %v194_v7, %v195_v6 }
 0x238   :  { %v198_v9 = vadd.f32 1e-05, %v196_v8 }
 0x23a   :  { %386 = vrsqrt.f32 %v198_v9  ;;  %vm205_vm5 = vweird.f32 %v198_v9 }
 0x240   :  { %v387_v10 = vpop.eup %386 }
 0x241   :  { %v200_v11 = vmul.f32 %v387_v10, %v198_v9  ;;  %vm206_vm4 = vweird.f32 %v387_v10 }
 0x242   :  { %vm207_vm6 = vmor %vm205_vm5, %vm206_vm4 }
 0x243   :  { %v201_v12 = vmul.f32 %v387_v10, %v200_v11 }
 0x245   :  { %v202_v13 = vmul.f32 0.5, %v201_v12 }
 0x247   :  { %v203_v14 = vsub.f32 1.5, %v202_v13 }
 0x249   :  { %v204_v15 = vmul.f32 %v387_v10, %v203_v14 }
 0x24b   :  { %v208_v18 = vsel %vm207_vm6, %v387_v10, %v204_v15 }
 0x24c   :  { %v209_v19 = vmul.f32 %v208_v18, %v197_v16 }
 0x24e   :  { %v215_v21 = vmul.f32 %v378_v17, %v209_v19 }
 0x250   :  { %v221_v22 = vadd.f32 %v379_v20, %v215_v21 }
 0x252   :  { %v222_v23 = vmax.f32 %v221_v22, 0.0 }
 0x254   :  { %261 = vmatmul.f32.vlgmr.msra.gmra.mxu2 %v222_v23 }
 0x2d7   :  { %v262_v25 = vpop.f32.mrf.mxu2 }
 0x2d8   :  { %v263_v26 = vadd.f32 %v380_v24, %v262_v25 }
 0x2da   :  { %265 = vadd.xlane.f32.xlu2 %v263_v26  ;;  %v268_v27 = vmul.f32 %v263_v26, %v263_v26 }
 0x2e2   :  { %269 = vadd.xlane.f32.xlu2 %v268_v27 }
 0x34d   :  { %v266_v41 = vpop.xlane.xlu2 %265 }
 0x34e   :  { %v267_v44 = vmul.f32 0.015625, %v266_v41 }
 0x350   :  { %v272_v47 = vmul.f32 %v267_v44, %v267_v44  ;;  %v274_v57 = vsub.f32 %v263_v26, %v267_v44 }
 0x355   :  { %v270_v46 = vpop.xlane.xlu2 %269 }
 0x356   :  { %v271_v48 = vmul.f32 0.015625, %v270_v46 }
 0x358   :  { %v273_v49 = vsub.f32 %v271_v48, %v272_v47 }
 0x35a   :  { %v275_v50 = vadd.f32 1e-05, %v273_v49 }
 0x35c   :  { %388 = vrsqrt.f32 %v275_v50  ;;  %vm282_vm8 = vweird.f32 %v275_v50 }
 0x362   :  { %v389_v51 = vpop.eup %388 }
 0x363   :  { %v277_v52 = vmul.f32 %v389_v51, %v275_v50  ;;  %vm283_vm7 = vweird.f32 %v389_v51 }
 0x364   :  { %vm284_vm9 = vmor %vm282_vm8, %vm283_vm7 }
 0x365   :  { %v278_v53 = vmul.f32 %v389_v51, %v277_v52 }
 0x367   :  { %v279_v54 = vmul.f32 0.5, %v278_v53 }
 0x369   :  { %v280_v55 = vsub.f32 1.5, %v279_v54 }
 0x36b   :  { %v281_v56 = vmul.f32 %v389_v51, %v280_v55 }
 0x36d   :  { %v285_v59 = vsel %vm284_vm9, %v389_v51, %v281_v56 }
 0x36e   :  { %v286_v60 = vmul.f32 %v285_v59, %v274_v57 }
 0x370   :  { %v292_v62 = vmul.f32 %v381_v58, %v286_v60 }
 0x372   :  { %v298_v63 = vadd.f32 %v382_v61, %v292_v62 }
 0x374   :  { %v299_v0 = vmax.f32 %v298_v63, 0.0 }
 0x376   :  { %333 = vmatmul.f32.vlgmr.msra.gmra.mxu3 %v299_v0 }
 0x3f9   :  { %v334_v2 = vpop.f32.mrf.mxu3 }
 0x3fa   :  { %v342_v3 = vadd.f32 %v383_v1, %v334_v2 }
 0x3fc   :  { %v343_v5 = vadd.f32 %v342_v3, %v564_v4 }
 0x3fe   :  { %344 = vst.msk [vmem:[#allocation10] sm:$0xff] %vm88_vm0, %v343_v5 }
 0x3ff   :  { %355 = dma.vmem_to_hbm [thread:$0]  %s351_s3, 128, %s353_s13, [#allocation4]  }
 0x400   :  { %516 = dma.done.wait [#allocation4], 128  }
 0x401   :  { %517 = vsyncadd [#allocation4], 4294967168 }
 0x402   :  { %360 = vsyncpa [#allocation3], 1 }
 0x403   :  { %361 = vsyncpa [#allocation6], 1 }
 0x404   :  { %362 = vsyncpa [#allocation9], 1 }
 0x405   :  { %363 = vsyncpa [#allocation4], 1 }

// kernel: tpu_custom_call.1
= control target key start
LH: loop header
LB: loop body
LE: loop exit
PB: predicated region body
PF: predicated region fallthrough
CT: control target
= control target key end

     0   :  { %9 = vsyncpa [#allocation3], 0  ;;  %s573_s0 = inlined_call_operand.hbm [shape: f32[8,32], index: 0, kind: input, shape index: {}]   ;;  %s574_s1 = inlined_call_operand.hbm [shape: f32[4,128,128], index: 1, kind: input, shape index: {}]   ;;  %s575_s2 = inlined_call_operand.hbm [shape: f32[4,1,128], index: 2, kind: input, shape index: {}]   ;;  %s576_s3 = inlined_call_operand.hbm [shape: f32[3,2,1,128], index: 3, kind: input, shape index: {}]   ;;  %s577_s4 = inlined_call_operand.hbm [shape: f32[8,32], index: 4, kind: output, shape index: {}]  }
   0x1   :  { %10 = vsyncpa [#allocation6], 0 }
   0x2   :  { %11 = vsyncpa [#allocation9], 0  ;;  %s28_s17 = sshll.u32 %s574_s1, 4  ;;  %s29_s17 = int_to_ptr.hbm [resolvable:$true] %s28_s17 }
   0x3   :  { %12 = vsyncpa [#allocation4], 0  ;;  %s518_s18 = smov [#allocation5]   ;;  %s18_s22 = sshll.u32 %s573_s0, 4  ;;  %s19_s22 = int_to_ptr.hbm [resolvable:$true] %s18_s22 }
   0x4   :  { %s30_s19 = sshll.u32 %s518_s18, 4  ;;  %s519_s23 = smov 128   ;;  %s31_s19 = int_to_ptr.vmem [resolvable:$true] %s30_s19 }
   0x5   :  { %s520_s24 = smov 8   ;;  %s521_s25 = smov [#allocation2]  }
   0x6   :  { %36 = dma.hbm_to_vmem [thread:$0]  %s29_s17, 8192, %s31_s19, [#allocation6], %s519_s23, %s519_s23, %s520_s24  }
   0x7   :  { %s20_s26 = sshll.u32 %s521_s25, 4  ;;  %s41_s29 = sshll.u32 %s575_s2, 4  ;;  %s21_s26 = int_to_ptr.vmem [resolvable:$true] %s20_s26  ;;  %s42_s29 = int_to_ptr.hbm [resolvable:$true] %s41_s29 }
   0x8   :  { %23 = dma.hbm_to_vmem [thread:$0]  %s19_s22, 128, %s21_s26, [#allocation3]  }
   0x9   :  { %s522_s1 = smov [#allocation7]   ;;  %s54_s0 = sshll.u32 %s576_s3, 4  ;;  %s55_s0 = int_to_ptr.hbm [resolvable:$true] %s54_s0 }
   0xa   :  { %s43_s30 = sshll.u32 %s522_s1, 4  ;;  %s523_s7 = smov 16   ;;  %s44_s30 = int_to_ptr.vmem [resolvable:$true] %s43_s30 }
   0xb   :  { %s524_s8 = smov 1   ;;  %s525_s9 = smov [#allocation8]  }
   0xc   :  { %49 = dma.hbm_to_vmem [thread:$0]  %s42_s29, 64, %s44_s30, [#allocation6], %s523_s7, %s523_s7, %s524_s8  }
   0xd   :  { %s56_s10 = sshll.u32 %s525_s9, 4  ;;  %s57_s10 = int_to_ptr.vmem [resolvable:$true] %s56_s10 }
   0xe   :  { %62 = dma.hbm_to_vmem [thread:$0]  %s55_s0, 96, %s57_s10, [#allocation9], %s523_s7, %s523_s7, %s524_s8  }
   0xf   :  { %510 = dma.done.wait [#allocation3], 128  }
  0x10   :  { %511 = vsyncadd [#allocation3], 4294967168 }
  0x11   :  { %512 = dma.done.wait [#allocation6], 8256  }
  0x12   :  { %513 = vsyncadd [#allocation6], 4294959040 }
  0x13   :  { %514 = dma.done.wait [#allocation9], 96  }
  0x14   :  { %515 = vsyncadd [#allocation9], 4294967200  ;;  %v83_v0 = vld [vmem:[#allocation5 + $0x18] sm:$0xff]  ;;  %v82_v1 = vld [vmem:[#allocation5 + $0x10] sm:$0xff]  ;;  %vm88_vm0 = vcmask 261120   ;;  %s526_s2 = smov [#allocation10]  }
  0x15   :  { %104 = vmatpush.msra.mxu0 %v83_v0  ;;  %v81_v2 = vld [vmem:[#allocation5 + $0x8] sm:$0xff]  ;;  %v80_v3 = vld [vmem:[#allocation5] sm:$0xff]  ;;  %v564_v4 = vld [vmem:[#allocation2] sm:$0xff]  ;;  %s350_s3 = sshll.u32 %s526_s2, 4  ;;  %s352_s13 = sshll.u32 %s577_s4, 4  ;;  %s351_s3 = int_to_ptr.vmem [resolvable:$true] %s350_s3  ;;  %s353_s13 = int_to_ptr.hbm [resolvable:$true] %s352_s13 }
  0x16   :  { %v374_v5 = vld [vmem:[#allocation7] ss:$0 sm:$0xff]  ;;  %v162_v9 = vld [vmem:[#allocation5 + $0xf8] sm:$0xff]  ;;  %v161_v10 = vld [vmem:[#allocation5 + $0xf0] sm:$0xff] }
  0x17   :  { %105 = vmatpush.msra.mxu0 %v82_v1  ;;  %168 = vmatpush.msra.mxu1 %v162_v9  ;;  %v160_v11 = vld [vmem:[#allocation5 + $0xe8] sm:$0xff]  ;;  %v159_v12 = vld [vmem:[#allocation5 + $0xe0] sm:$0xff]  ;;  %v158_v13 = vld [vmem:[#allocation5 + $0xd8] sm:$0xff] }
  0x18   :  { %v157_v14 = vld [vmem:[#allocation5 + $0xd0] sm:$0xff]  ;;  %v156_v15 = vld [vmem:[#allocation5 + $0xc8] sm:$0xff]  ;;  %v155_v16 = vld [vmem:[#allocation5 + $0xc0] sm:$0xff] }
  0x19   :  { %106 = vmatpush.msra.mxu0 %v81_v2  ;;  %169 = vmatpush.msra.mxu1 %v161_v10  ;;  %v154_v17 = vld [vmem:[#allocation5 + $0xb8] sm:$0xff]  ;;  %v153_v18 = vld [vmem:[#allocation5 + $0xb0] sm:$0xff]  ;;  %v152_v19 = vld [vmem:[#allocation5 + $0xa8] sm:$0xff] }
  0x1a   :  { %v151_v20 = vld [vmem:[#allocation5 + $0xa0] sm:$0xff]  ;;  %v150_v21 = vld [vmem:[#allocation5 + $0x98] sm:$0xff]  ;;  %v149_v23 = vld [vmem:[#allocation5 + $0x90] sm:$0xff] }
  0x1b   :  { %107 = vmatpush.msra.mxu0 %v80_v3  ;;  %170 = vmatpush.msra.mxu1 %v160_v11  ;;  %v148_v24 = vld [vmem:[#allocation5 + $0x88] sm:$0xff]  ;;  %v147_v26 = vld [vmem:[#allocation5 + $0x80] sm:$0xff]  ;;  %v239_v50 = vld [vmem:[#allocation5 + $0x178] sm:$0xff] }
  0x1c   :  { %364 = vmatmul.msk.f32.vlgmr.msra.gmra.mxu0 %vm88_vm0, %v564_v4  ;;  %v375_v39 = vld [vmem:[#allocation8] ss:$0 sm:$0xff]  ;;  %v376_v42 = vld [vmem:[#allocation8 + $0x1] ss:$0 sm:$0xff]  ;;  %v377_v46 = vld [vmem:[#allocation7 + $0x1] ss:$0 sm:$0xff]  ;;  %245 = vmatpush.msra.mxu2 %v239_v50 }
  0x1d   :  { %171 = vmatpush.msra.mxu1 %v159_v12  ;;  %v238_v51 = vld [vmem:[#allocation5 + $0x170] sm:$0xff]  ;;  %v237_v52 = vld [vmem:[#allocation5 + $0x168] sm:$0xff]  ;;  %v236_v53 = vld [vmem:[#allocation5 + $0x160] sm:$0xff] }
  0x1e   :  { %246 = vmatpush.msra.mxu2 %v238_v51  ;;  %v235_v54 = vld [vmem:[#allocation5 + $0x158] sm:$0xff]  ;;  %v234_v55 = vld [vmem:[#allocation5 + $0x150] sm:$0xff]  ;;  %v233_v56 = vld [vmem:[#allocation5 + $0x148] sm:$0xff] }
  0x1f   :  { %172 = vmatpush.msra.mxu1 %v158_v13  ;;  %v232_v57 = vld [vmem:[#allocation5 + $0x140] sm:$0xff]  ;;  %v231_v58 = vld [vmem:[#allocation5 + $0x138] sm:$0xff]  ;;  %v230_v59 = vld [vmem:[#allocation5 + $0x130] sm:$0xff] }
  0x20   :  { %247 = vmatpush.msra.mxu2 %v237_v52  ;;  %v229_v60 = vld [vmem:[#allocation5 + $0x128] sm:$0xff]  ;;  %v228_v61 = vld [vmem:[#allocation5 + $0x120] sm:$0xff]  ;;  %v227_v62 = vld [vmem:[#allocation5 + $0x118] sm:$0xff] }
  0x21   :  { %173 = vmatpush.msra.mxu1 %v157_v14  ;;  %v226_v0 = vld [vmem:[#allocation5 + $0x110] sm:$0xff]  ;;  %v225_v1 = vld [vmem:[#allocation5 + $0x108] sm:$0xff]  ;;  %v224_v3 = vld [vmem:[#allocation5 + $0x100] sm:$0xff] }
  0x22   :  { %248 = vmatpush.msra.mxu2 %v236_v53 }
  0x23   :  { %174 = vmatpush.msra.mxu1 %v156_v15 }
  0x24   :  { %249 = vmatpush.msra.mxu2 %v235_v54 }
  0x25   :  { %175 = vmatpush.msra.mxu1 %v155_v16 }
  0x26   :  { %250 = vmatpush.msra.mxu2 %v234_v55 }
  0x27   :  { %176 = vmatpush.msra.mxu1 %v154_v17  ;;  %v378_v17 = vld [vmem:[#allocation8 + $0x2] ss:$0 sm:$0xff] }
  0x28   :  { %251 = vmatpush.msra.mxu2 %v233_v56 }
  0x29   :  { %177 = vmatpush.msra.mxu1 %v153_v18 }
  0x2a   :  { %252 = vmatpush.msra.mxu2 %v232_v57 }
  0x2b   :  { %178 = vmatpush.msra.mxu1 %v152_v19 }
  0x2c   :  { %253 = vmatpush.msra.mxu2 %v231_v58  ;;  %v381_v58 = vld [vmem:[#allocation8 + $0x4] ss:$0 sm:$0xff] }
  0x2d   :  { %179 = vmatpush.msra.mxu1 %v151_v20  ;;  %v379_v20 = vld [vmem:[#allocation8 + $0x3] ss:$0 sm:$0xff] }
  0x2e   :  { %254 = vmatpush.msra.mxu2 %v230_v59 }
  0x2f   :  { %180 = vmatpush.msra.mxu1 %v150_v21 }
  0x30   :  { %255 = vmatpush.msra.mxu2 %v229_v60 }
  0x31   :  { %181 = vmatpush.msra.mxu1 %v149_v23 }
  0x32   :  { %256 = vmatpush.msra.mxu2 %v228_v61  ;;  %v382_v61 = vld [vmem:[#allocation8 + $0x5] ss:$0 sm:$0xff] }
  0x33   :  { %182 = vmatpush.msra.mxu1 %v148_v24  ;;  %v380_v24 = vld [vmem:[#allocation7 + $0x2] ss:$0 sm:$0xff] }
  0x34   :  { %257 = vmatpush.msra.mxu2 %v227_v62 }
  0x35   :  { %183 = vmatpush.msra.mxu1 %v147_v26 }
  0x36   :  { %258 = vmatpush.msra.mxu2 %v226_v0 }
  0x38   :  { %259 = vmatpush.msra.mxu2 %v225_v1  ;;  %v383_v1 = vld [vmem:[#allocation7 + $0x3] ss:$0 sm:$0xff] }
  0x3a   :  { %260 = vmatpush.msra.mxu2 %v224_v3 }
  0x99   :  { %v109_v6 = vpop.f32.mrf.mxu0 }
  0x9a   :  { %v110_v7 = vadd.f32 %v374_v5, %v109_v6 }
  0x9c   :  { %112 = vadd.xlane.f32.xlu0 %v110_v7  ;;  %v115_v8 = vmul.f32 %v110_v7, %v110_v7 }
  0xa4   :  { %116 = vadd.xlane.f32.xlu0 %v115_v8 }
 0x10f   :  { %v113_v22 = vpop.xlane.xlu0 %112 }
 0x110   :  { %v114_v25 = vmul.f32 0.015625, %v113_v22 }
 0x112   :  { %v119_v28 = vmul.f32 %v114_v25, %v114_v25  ;;  %v121_v38 = vsub.f32 %v110_v7, %v114_v25 }
 0x117   :  { %v117_v27 = vpop.xlane.xlu0 %116 }
 0x118   :  { %v118_v29 = vmul.f32 0.015625, %v117_v27 }
 0x11a   :  { %v120_v30 = vsub.f32 %v118_v29, %v119_v28  ;;  %v316_v28 = vld [vmem:[#allocation5 + $0x1f8] sm:$0xff]  ;;  %v315_v29 = vld [vmem:[#allocation5 + $0x1f0] sm:$0xff] }
 0x11b   :  { %317 = vmatpush.msra.mxu3 %v316_v28 }
 0x11c   :  { %v122_v31 = vadd.f32 1e-05, %v120_v30  ;;  %v314_v30 = vld [vmem:[#allocation5 + $0x1e8] sm:$0xff] }
 0x11d   :  { %318 = vmatpush.msra.mxu3 %v315_v29 }
 0x11e   :  { %384 = vrsqrt.f32 %v122_v31  ;;  %vm129_vm2 = vweird.f32 %v122_v31 }
 0x11f   :  { %319 = vmatpush.msra.mxu3 %v314_v30 }
 0x124   :  { %v385_v32 = vpop.eup %384 }
 0x125   :  { %v124_v33 = vmul.f32 %v385_v32, %v122_v31  ;;  %vm130_vm1 = vweird.f32 %v385_v32  ;;  %v313_v31 = vld [vmem:[#allocation5 + $0x1e0] sm:$0xff] }
 0x126   :  { %vm131_vm3 = vmor %vm129_vm2, %vm130_vm1  ;;  %320 = vmatpush.msra.mxu3 %v313_v31 }
 0x127   :  { %v125_v34 = vmul.f32 %v385_v32, %v124_v33  ;;  %v311_v33 = vld [vmem:[#allocation5 + $0x1d0] sm:$0xff] }
 0x129   :  { %v126_v35 = vmul.f32 0.5, %v125_v34  ;;  %v310_v34 = vld [vmem:[#allocation5 + $0x1c8] sm:$0xff] }
 0x12b   :  { %v127_v36 = vsub.f32 1.5, %v126_v35  ;;  %v309_v35 = vld [vmem:[#allocation5 + $0x1c0] sm:$0xff] }
 0x12d   :  { %v128_v37 = vmul.f32 %v385_v32, %v127_v36  ;;  %v308_v36 = vld [vmem:[#allocation5 + $0x1b8] sm:$0xff] }
 0x12f   :  { %v132_v40 = vsel %vm131_vm3, %v385_v32, %v128_v37  ;;  %v312_v32 = vld [vmem:[#allocation5 + $0x1d8] sm:$0xff]  ;;  %v307_v37 = vld [vmem:[#allocation5 + $0x1b0] sm:$0xff] }
 0x130   :  { %v133_v41 = vmul.f32 %v132_v40, %v121_v38  ;;  %321 = vmatpush.msra.mxu3 %v312_v32  ;;  %v306_v38 = vld [vmem:[#allocation5 + $0x1a8] sm:$0xff]  ;;  %v304_v40 = vld [vmem:[#allocation5 + $0x198] sm:$0xff] }
 0x132   :  { %v138_v43 = vmul.f32 %v375_v39, %v133_v41  ;;  %322 = vmatpush.msra.mxu3 %v311_v33  ;;  %v305_v39 = vld [vmem:[#allocation5 + $0x1a0] sm:$0xff] }
 0x134   :  { %v144_v44 = vadd.f32 %v376_v42, %v138_v43  ;;  %323 = vmatpush.msra.mxu3 %v310_v34  ;;  %v303_v42 = vld [vmem:[#allocation5 + $0x190] sm:$0xff]  ;;  %v302_v43 = vld [vmem:[#allocation5 + $0x188] sm:$0xff] }
 0x136   :  { %v145_v45 = vmax.f32 %v144_v44, 0.0  ;;  %324 = vmatpush.msra.mxu3 %v309_v35 }
 0x138   :  { %184 = vmatmul.f32.vlgmr.msra.gmra.mxu1 %v145_v45  ;;  %325 = vmatpush.msra.mxu3 %v308_v36  ;;  %v301_v45 = vld [vmem:[#allocation5 + $0x180] sm:$0xff] }
 0x13a   :  { %326 = vmatpush.msra.mxu3 %v307_v37 }
 0x13c   :  { %327 = vmatpush.msra.mxu3 %v306_v38 }
 0x13e   :  { %328 = vmatpush.msra.mxu3 %v305_v39 }
 0x140   :  { %329 = vmatpush.msra.mxu3 %v304_v40 }
 0x142   :  { %330 = vmatpush.msra.mxu3 %v303_v42 }
 0x144   :  { %331 = vmatpush.msra.mxu3 %v302_v43 }
 0x146   :  { %332 = vmatpush.msra.mxu3 %v301_v45 }
 0x1b5   :  { %v185_v47 = vpop.f32.mrf.mxu1 }
 0x1b6   :  { %v186_v48 = vadd.f32 %v377_v46, %v185_v47 }
 0x1b8   :  { %188 = vadd.xlane.f32.xlu1 %v186_v48  ;;  %v191_v49 = vmul.f32 %v186_v48, %v186_v48 }
 0x1c0   :  { %192 = vadd.xlane.f32.xlu1 %v191_v49 }
 0x22b   :  { %v189_v63 = vpop.xlane.xlu1 %188 }
 0x22c   :  { %v190_v2 = vmul.f32 0.015625, %v189_v63 }
 0x22e   :  { %v195_v6 = vmul.f32 %v190_v2, %v190_v2  ;;  %v197_v16 = vsub.f32 %v186_v48, %v190_v2 }
 0x233   :  { %v193_v5 = vpop.xlane.xlu1 %192 }
 0x234   :  { %v194_v7 = vmul.f32 0.015625, %v193_v5 }
 0x236   :  { %v196_v8 = vsub.f32 %v194_v7, %v195_v6 }
 0x238   :  { %v198_v9 = vadd.f32 1e-05, %v196_v8 }
 0x23a   :  { %386 = vrsqrt.f32 %v198_v9  ;;  %vm205_vm5 = vweird.f32 %v198_v9 }
 0x240   :  { %v387_v10 = vpop.eup %386 }
 0x241   :  { %v200_v11 = vmul.f32 %v387_v10, %v198_v9  ;;  %vm206_vm4 = vweird.f32 %v387_v10 }
 0x242   :  { %vm207_vm6 = vmor %vm205_vm5, %vm206_vm4 }
 0x243   :  { %v201_v12 = vmul.f32 %v387_v10, %v200_v11 }
 0x245   :  { %v202_v13 = vmul.f32 0.5, %v201_v12 }
 0x247   :  { %v203_v14 = vsub.f32 1.5, %v202_v13 }
 0x249   :  { %v204_v15 = vmul.f32 %v387_v10, %v203_v14 }
 0x24b   :  { %v208_v18 = vsel %vm207_vm6, %v387_v10, %v204_v15 }
 0x24c   :  { %v209_v19 = vmul.f32 %v208_v18, %v197_v16 }
 0x24e   :  { %v215_v21 = vmul.f32 %v378_v17, %v209_v19 }
 0x250   :  { %v221_v22 = vadd.f32 %v379_v20, %v215_v21 }
 0x252   :  { %v222_v23 = vmax.f32 %v221_v22, 0.0 }
 0x254   :  { %261 = vmatmul.f32.vlgmr.msra.gmra.mxu2 %v222_v23 }
 0x2d7   :  { %v262_v25 = vpop.f32.mrf.mxu2 }
 0x2d8   :  { %v263_v26 = vadd.f32 %v380_v24, %v262_v25 }
 0x2da   :  { %265 = vadd.xlane.f32.xlu2 %v263_v26  ;;  %v268_v27 = vmul.f32 %v263_v26, %v263_v26 }
 0x2e2   :  { %269 = vadd.xlane.f32.xlu2 %v268_v27 }
 0x34d   :  { %v266_v41 = vpop.xlane.xlu2 %265 }
 0x34e   :  { %v267_v44 = vmul.f32 0.015625, %v266_v41 }
 0x350   :  { %v272_v47 = vmul.f32 %v267_v44, %v267_v44  ;;  %v274_v57 = vsub.f32 %v263_v26, %v267_v44 }
 0x355   :  { %v270_v46 = vpop.xlane.xlu2 %269 }
 0x356   :  { %v271_v48 = vmul.f32 0.015625, %v270_v46 }
 0x358   :  { %v273_v49 = vsub.f32 %v271_v48, %v272_v47 }
 0x35a   :  { %v275_v50 = vadd.f32 1e-05, %v273_v49 }
 0x35c   :  { %388 = vrsqrt.f32 %v275_v50  ;;  %vm282_vm8 = vweird.f32 %v275_v50 }
 0x362   :  { %v389_v51 = vpop.eup %388 }
 0x363   :  { %v277_v52 = vmul.f32 %v389_v51, %v275_v50  ;;  %vm283_vm7 = vweird.f32 %v389_v51 }
 0x364   :  { %vm284_vm9 = vmor %vm282_vm8, %vm283_vm7 }
 0x365   :  { %v278_v53 = vmul.f32 %v389_v51, %v277_v52 }
 0x367   :  { %v279_v54 = vmul.f32 0.5, %v278_v53 }
 0x369   :  { %v280_v55 = vsub.f32 1.5, %v279_v54 }
 0x36b   :  { %v281_v56 = vmul.f32 %v389_v51, %v280_v55 }
 0x36d   :  { %v285_v59 = vsel %vm284_vm9, %v389_v51, %v281_v56 }
 0x36e   :  { %v286_v60 = vmul.f32 %v285_v59, %v274_v57 }
 0x370   :  { %v292_v62 = vmul.f32 %v381_v58, %v286_v60 }
 0x372   :  { %v298_v63 = vadd.f32 %v382_v61, %v292_v62 }
 0x374   :  { %v299_v0 = vmax.f32 %v298_v63, 0.0 }
 0x376   :  { %333 = vmatmul.f32.vlgmr.msra.gmra.mxu3 %v299_v0 }
 0x3f9   :  { %v334_v2 = vpop.f32.mrf.mxu3 }
 0x3fa   :  { %v342_v3 = vadd.f32 %v383_v1, %v334_v2 }
 0x3fc   :  { %v343_v5 = vadd.f32 %v342_v3, %v564_v4 }
 0x3fe   :  { %344 = vst.msk [vmem:[#allocation10] sm:$0xff] %vm88_vm0, %v343_v5 }
 0x3ff   :  { %355 = dma.vmem_to_hbm [thread:$0]  %s351_s3, 128, %s353_s13, [#allocation4]  }
 0x400   :  { %516 = dma.done.wait [#allocation4], 128  }
 0x401   :  { %517 = vsyncadd [#allocation4], 4294967168 }
 0x402   :  { %360 = vsyncpa [#allocation3], 1 }
 0x403   :  { %361 = vsyncpa [#allocation6], 1 }
 0x404   :  { %362 = vsyncpa [#allocation9], 1 }
 0x405   :  { %363 = vsyncpa [#allocation4], 1 }

</bundles_post_ra>
